<compile_context>
chip_gen: v7x
topology: tpu7x:2x2x1
jax: 0.10.0
libtpu: 0.0.40
codegen_flags: <defaults>
</compile_context>

<pallas_src>
import functools

import jax
import jax.numpy as jnp
import numpy as np
from jax.experimental import pallas as pl
from jax.experimental.pallas import tpu as pltpu


# ---------------------------------------------------------------------------
# Pallas kernels: tiled matmul + folded-BN bias (+ residual / fused downsample)
# (+ ReLU).  Weights / bias are grid-invariant (VMEM-resident); the Cout slab
# is sliced in-kernel only when there is more than one Cout tile.
# ---------------------------------------------------------------------------
def _col_slab(ref, j, tn, whole):
    if whole:                       # single Cout tile -> no slicing needed
        return ref[...]
    c0 = pl.multiple_of(j * tn, 128)
    return ref[:, pl.ds(c0, tn)]


def _mm_bn_kernel(p_ref, w_ref, b_ref, o_ref, *, tn, whole, apply_relu):
    j = pl.program_id(1)
    acc = jnp.dot(p_ref[...], _col_slab(w_ref, j, tn, whole),
                  preferred_element_type=jnp.float32)
    y = acc + _col_slab(b_ref, j, tn, whole)
    if apply_relu:
        y = jnp.maximum(y, 0.0)
    o_ref[...] = y.astype(o_ref.dtype)


def _mm_bn_res_kernel(p_ref, w_ref, b_ref, r_ref, o_ref, *, tn, whole, apply_relu):
    j = pl.program_id(1)
    acc = jnp.dot(p_ref[...], _col_slab(w_ref, j, tn, whole),
                  preferred_element_type=jnp.float32)
    y = acc + _col_slab(b_ref, j, tn, whole) + r_ref[...].astype(jnp.float32)
    if apply_relu:
        y = jnp.maximum(y, 0.0)
    o_ref[...] = y.astype(o_ref.dtype)


def _mm_bn_ds_kernel(p_ref, w_ref, b_ref, xd_ref, wd_ref, bd_ref, o_ref, *,
                     tn, whole, apply_relu):
    j = pl.program_id(1)
    # conv2 path
    acc = jnp.dot(p_ref[...], _col_slab(w_ref, j, tn, whole),
                  preferred_element_type=jnp.float32)
    # fused 1x1 downsample path (same M tile, rides under the MXU stream)
    accd = jnp.dot(xd_ref[...], _col_slab(wd_ref, j, tn, whole),
                   preferred_element_type=jnp.float32)
    y = (acc + _col_slab(b_ref, j, tn, whole)
         + accd + _col_slab(bd_ref, j, tn, whole))
    if apply_relu:
        y = jnp.maximum(y, 0.0)
    o_ref[...] = y.astype(o_ref.dtype)


# ---------------------------------------------------------------------------
# Helpers (plain-JAX glue)
# ---------------------------------------------------------------------------
def _round_up(x, m):
    return ((x + m - 1) // m) * m


@functools.lru_cache(maxsize=1)
def _vmem_limit_cap():
    """Generation-aware VMEM cap (bytes): ~60% of per-core capacity."""
    cap = 64 * 1024 * 1024          # assume the tightest (v7x: 64 MiB/TC)
    try:
        info = pltpu.get_tpu_info()
        cap = int(getattr(info, "vmem_capacity_bytes", cap))
    except Exception:
        pass
    return max(int(0.6 * cap), 32 * 1024 * 1024)


def _pick_tiles(m, k, cout_pad):
    """Tile sizes scaled with K so each grid step carries MBs of operands."""
    # Cout tile: keep the whole lane-padded Cout resident per step when modest.
    tn = cout_pad if cout_pad <= 512 else 256
    m16 = _round_up(m, 16)                       # bf16 sublane packing
    # Target ~4 MB of bf16 patch bytes per step; round to 256.
    tm = (4 * 1024 * 1024) // max(2 * k, 1)
    tm = int(min(max(tm, 256), 2048))
    tm = _round_up(tm, 256)
    if m16 <= tm:
        if m16 >= 512:
            tm = _round_up((m16 + 1) // 2, 256)  # >=2 M tiles (v7x: 2 TCs)
        else:
            tm = m16                             # tiny problem: single tile
    return tm, tn


def _im2col(x_nhwc, ksize, stride, padding):
    """Extract conv patches (in x's dtype). Returns (N*Ho*Wo, k*k*Cin), (Ho,Wo)."""
    n, h, w, c = x_nhwc.shape
    if padding:
        x_nhwc = jnp.pad(x_nhwc, ((0, 0), (padding, padding),
                                  (padding, padding), (0, 0)))
    ho = (h + 2 * padding - ksize) // stride + 1
    wo = (w + 2 * padding - ksize) // stride + 1
    cols = []
    for kh in range(ksize):
        for kw in range(ksize):
            sl = x_nhwc[:, kh: kh + (ho - 1) * stride + 1: stride,
                           kw: kw + (wo - 1) * stride + 1: stride, :]
            cols.append(sl)
    patches = jnp.concatenate(cols, axis=-1)           # (N, Ho, Wo, k*k*Cin)
    return patches.reshape(n * ho * wo, ksize * ksize * c), (ho, wo)


def _fold_bn(bn, cout_pad, eps):
    """Return (per-channel scale (Cout,), lane-padded bias (1, Cout_pad))."""
    inv = bn["gamma"] * jax.lax.rsqrt(bn["var"] + eps)
    bias = bn["beta"] - bn["mean"] * inv
    c = bias.shape[0]
    bias = jnp.pad(bias, (0, cout_pad - c)).reshape(1, cout_pad).astype(jnp.float32)
    return inv.astype(jnp.float32), bias


def _weight_matrix(w_oihw, scale, cout_pad):
    """(Cout,Cin,kh,kw) -> (kh*kw*Cin, Cout_pad) bf16 with BN scale pre-folded."""
    cout, cin, kh, kw = w_oihw.shape
    wmat = jnp.transpose(w_oihw, (2, 3, 1, 0)).reshape(kh * kw * cin, cout)
    wmat = wmat * scale[None, :]                       # fold BN scale (f32)
    wmat = jnp.pad(wmat, ((0, 0), (0, cout_pad - cout)))
    return wmat.astype(jnp.bfloat16)


# ---------------------------------------------------------------------------
# Fused conv (im2col matmul) + BN [+ residual / fused downsample] [+ ReLU]
# ---------------------------------------------------------------------------
def conv_bn(x_nhwc, w_oihw, bn, *, stride, ksize, padding, relu,
            residual_nhwc=None, downsample=None, out_dtype=jnp.float32,
            eps=1e-5):
    """x_nhwc: (N,H,W,Cin).  w_oihw: PyTorch layout (Cout,Cin,kh,kw).
    bn: dict(gamma, beta, mean, var) each (Cout,).
    residual_nhwc: identity residual (same spatial/channel shape as output).
    downsample: dict(x=strided NHWC slice, w=(Cout,Cin,1,1), bn=...) -> fused
    1x1-conv+BN residual computed inside the same kernel."""
    x_nhwc = x_nhwc.astype(jnp.bfloat16)    # bf16 before im2col: halves HBM bytes
    n = x_nhwc.shape[0]
    cout = w_oihw.shape[0]
    cout_pad = _round_up(cout, 128)         # lane-dense output stores

    patches, (ho, wo) = _im2col(x_nhwc, ksize, stride, padding)
    m, k = patches.shape
    tm, tn = _pick_tiles(m, k, cout_pad)
    m_pad = _round_up(m, tm)
    if m_pad != m:
        patches = jnp.pad(patches, ((0, m_pad - m), (0, 0)))

    scale, bias = _fold_bn(bn, cout_pad, eps)
    wmat = _weight_matrix(w_oihw, scale, cout_pad)
    whole = (tn == cout_pad)                # single Cout tile -> no in-kernel slice

    args = [patches, wmat, bias]
    in_specs = [
        pl.BlockSpec((tm, k), lambda i, j: (i, 0)),
        pl.BlockSpec((k, cout_pad), lambda i, j: (0, 0)),   # resident weights
        pl.BlockSpec((1, cout_pad), lambda i, j: (0, 0)),   # resident bias
    ]
    out_itemsize = jnp.dtype(out_dtype).itemsize
    # conservative double-buffered VMEM accounting
    vmem_bytes = (2 * tm * k * 2 + 2 * k * cout_pad * 2
                  + 2 * cout_pad * 4 + 2 * tm * tn * out_itemsize)
    flops = 2 * m_pad * k * cout_pad
    bytes_accessed = (patches.size * 2 + wmat.size * 2 + cout_pad * 4
                      + m_pad * cout_pad * out_itemsize)

    if downsample is not None:
        xd = downsample["x"].astype(jnp.bfloat16).reshape(m, -1)   # 1x1 conv -> (M, Cin)
        kd = xd.shape[1]
        if m_pad != m:
            xd = jnp.pad(xd, ((0, m_pad - m), (0, 0)))
        sd, bd = _fold_bn(downsample["bn"], cout_pad, eps)
        wd = _weight_matrix(downsample["w"], sd, cout_pad)
        args += [xd, wd, bd]
        in_specs += [
            pl.BlockSpec((tm, kd), lambda i, j: (i, 0)),
            pl.BlockSpec((kd, cout_pad), lambda i, j: (0, 0)),
            pl.BlockSpec((1, cout_pad), lambda i, j: (0, 0)),
        ]
        kernel = functools.partial(_mm_bn_ds_kernel, tn=tn, whole=whole,
                                   apply_relu=relu)
        vmem_bytes += 2 * tm * kd * 2 + 2 * kd * cout_pad * 2 + 2 * cout_pad * 4
        flops += 2 * m_pad * kd * cout_pad
        bytes_accessed += xd.size * 2 + wd.size * 2 + cout_pad * 4
    elif residual_nhwc is not None:
        res = residual_nhwc.astype(jnp.bfloat16).reshape(m, -1)
        res = jnp.pad(res, ((0, m_pad - m), (0, cout_pad - res.shape[1])))
        args += [res]
        in_specs += [pl.BlockSpec((tm, tn), lambda i, j: (i, j))]
        kernel = functools.partial(_mm_bn_res_kernel, tn=tn, whole=whole,
                                   apply_relu=relu)
        vmem_bytes += 2 * tm * tn * 2
        bytes_accessed += res.size * 2
    else:
        kernel = functools.partial(_mm_bn_kernel, tn=tn, whole=whole,
                                   apply_relu=relu)

    vmem_limit = int(min(max(int(1.5 * vmem_bytes) + (4 << 20), 16 << 20),
                         _vmem_limit_cap()))
    grid = (m_pad // tm, cout_pad // tn)

    out = pl.pallas_call(
        kernel,
        out_shape=jax.ShapeDtypeStruct((m_pad, cout_pad), out_dtype),
        grid=grid,
        in_specs=in_specs,
        out_specs=pl.BlockSpec((tm, tn), lambda i, j: (i, j)),
        compiler_params=pltpu.CompilerParams(
            dimension_semantics=("parallel", "parallel"),
            vmem_limit_bytes=vmem_limit),
        cost_estimate=pl.CostEstimate(
            flops=int(flops), transcendentals=0,
            bytes_accessed=int(bytes_accessed)),
    )(*args)

    # Only slice off padding that actually exists (for 128-multiple channel
    # counts / aligned M the padded layout flows straight into the next conv).
    if m_pad != m:
        out = out[:m]
    if cout_pad != cout:
        out = out[:, :cout]
    return out.reshape(n, ho, wo, out.shape[-1])


# ---------------------------------------------------------------------------
# BasicBlock parameters + forward
# ---------------------------------------------------------------------------
def init_basic_block_params(key, in_planes, planes, stride):
    ks = jax.random.split(key, 8)

    def conv_w(k, cout, cin, kk):
        fan_in = cin * kk * kk
        return jax.random.normal(k, (cout, cin, kk, kk), jnp.float32) / np.sqrt(fan_in)

    def bn_p(k, c):
        k1, k2, k3, k4 = jax.random.split(k, 4)
        return dict(
            gamma=1.0 + 0.1 * jax.random.normal(k1, (c,), jnp.float32),
            beta=0.1 * jax.random.normal(k2, (c,), jnp.float32),
            mean=0.1 * jax.random.normal(k3, (c,), jnp.float32),
            var=jax.random.uniform(k4, (c,), jnp.float32, 0.5, 1.5),
        )

    params = dict(
        conv1_w=conv_w(ks[0], planes, in_planes, 3),
        bn1=bn_p(ks[1], planes),
        conv2_w=conv_w(ks[2], planes, planes, 3),
        bn2=bn_p(ks[3], planes),
    )
    if stride != 1 or in_planes != planes:
        params["ds_w"] = conv_w(ks[4], planes, in_planes, 1)
        params["ds_bn"] = bn_p(ks[5], planes)
    return params


def basic_block_forward(params, x_nchw, *, stride):
    # NCHW in/out (PyTorch convention); NHWC bf16 inside the kernels.
    x = jnp.transpose(x_nchw, (0, 2, 3, 1)).astype(jnp.bfloat16)

    # out = relu(bn1(conv1(x))) -- emitted in bf16 (re-consumed as bf16 patches).
    out = conv_bn(x, params["conv1_w"], params["bn1"],
                  stride=stride, ksize=3, padding=1, relu=True,
                  out_dtype=jnp.bfloat16)

    # out = relu(bn2(conv2(out)) + downsample(x)) -- residual fused into conv2 kernel.
    if "ds_w" in params:
        xd = x[:, ::stride, ::stride, :]          # 1x1 conv, stride s, no padding
        out = conv_bn(out, params["conv2_w"], params["bn2"],
                      stride=1, ksize=3, padding=1, relu=True,
                      downsample=dict(x=xd, w=params["ds_w"], bn=params["ds_bn"]),
                      out_dtype=jnp.float32)
    else:
        out = conv_bn(out, params["conv2_w"], params["bn2"],
                      stride=1, ksize=3, padding=1, relu=True,
                      residual_nhwc=x, out_dtype=jnp.float32)

    return jnp.transpose(out, (0, 3, 1, 2)).astype(jnp.float32)


# ---------------------------------------------------------------------------
# Pure-JAX reference (for correctness check)
# ---------------------------------------------------------------------------
def _ref_conv(x_nhwc, w_oihw, stride, padding):
    w_hwio = jnp.transpose(w_oihw, (2, 3, 1, 0))
    return jax.lax.conv_general_dilated(
        x_nhwc, w_hwio, window_strides=(stride, stride),
        padding=[(padding, padding), (padding, padding)],
        dimension_numbers=("NHWC", "HWIO", "NHWC"))


def _ref_bn(x, bn, eps=1e-5):
    return (x - bn["mean"]) / jnp.sqrt(bn["var"] + eps) * bn["gamma"] + bn["beta"]


def reference_forward(params, x_nchw, *, stride):
    x = jnp.transpose(x_nchw, (0, 2, 3, 1)).astype(jnp.float32)
    out = jax.nn.relu(_ref_bn(_ref_conv(x, params["conv1_w"], stride, 1), params["bn1"]))
    out = _ref_bn(_ref_conv(out, params["conv2_w"], 1, 1), params["bn2"])
    if "ds_w" in params:
        ds = _ref_bn(_ref_conv(x, params["ds_w"], stride, 0), params["ds_bn"])
    else:
        ds = x
    out = jax.nn.relu(out + ds)
    return jnp.transpose(out, (0, 3, 1, 2))


# ---------------------------------------------------------------------------
if __name__ == "__main__":
    N, IN_PLANES, PLANES, H, W = 2, 4, 8, 16, 16
    STRIDE = 2  # exercises the downsample path (stride != 1 and in_planes != planes)

    key = jax.random.PRNGKey(0)
    kx, kp = jax.random.split(key)
    x = jax.random.normal(kx, (N, IN_PLANES, H, W), jnp.float32)
    params = init_basic_block_params(kp, IN_PLANES, PLANES, STRIDE)

    fwd = jax.jit(functools.partial(basic_block_forward, stride=STRIDE))
    out = jax.block_until_ready(fwd(params, x))

    ref = jax.block_until_ready(reference_forward(params, x, stride=STRIDE))
    assert out.shape == (N, PLANES, H // STRIDE, W // STRIDE), out.shape
    # bf16 operands / intermediates with f32 accumulate -> relaxed tolerance
    # vs. the f32 reference.
    np.testing.assert_allclose(np.asarray(out), np.asarray(ref), rtol=5e-2, atol=5e-2)

    print("KERNEL_OK")
</pallas_src>

<mosaic_0001>
module attributes {stable_mosaic.version = 11 : i64} {
  func.func @_mm_bn_kernel(%arg0: i32, %arg1: i32, %arg2: memref<128x36xbf16, #tpu.memory_space<vmem>>, %arg3: memref<36x128xbf16, #tpu.memory_space<vmem>>, %arg4: memref<1x128xf32, #tpu.memory_space<vmem>>, %arg5: memref<128x128xbf16, #tpu.memory_space<vmem>>) attributes {dimension_semantics = [#tpu.dimension_semantics<parallel>, #tpu.dimension_semantics<parallel>], iteration_bounds = array<i64: 1, 1>, scalar_prefetch = 0 : i64, scratch_operands = 0 : i64, tpu.core_type = #tpu.core_type<tc>, window_params = [{transform_indices = @transform_0, window_bounds = array<i64: 128, 36>}, {pipeline_mode = #tpu.pipeline_mode<synchronous>, transform_indices = @transform_1, window_bounds = array<i64: 36, 128>}, {pipeline_mode = #tpu.pipeline_mode<synchronous>, transform_indices = @transform_2, window_bounds = array<i64: 1, 128>}, {transform_indices = @transform_3, window_bounds = array<i64: 128, 128>}]} {
    %c0 = arith.constant 0 : index
    %c0_0 = arith.constant 0 : index
    %0 = vector.load %arg2[%c0, %c0_0] : memref<128x36xbf16, #tpu.memory_space<vmem>>, vector<128x36xbf16>
    %c0_1 = arith.constant 0 : index
    %c0_2 = arith.constant 0 : index
    %1 = vector.load %arg3[%c0_1, %c0_2] : memref<36x128xbf16, #tpu.memory_space<vmem>>, vector<36x128xbf16>
    %cst = arith.constant dense<0.000000e+00> : vector<128x128xf32>
    %2 = tpu.matmul %0, %1, %cst {dimension_numbers = #tpu.dot_dimension_numbers<[1], [0], [0], [1], [0, 0, 1, 1], [], []>} : vector<128x36xbf16>, vector<36x128xbf16>, vector<128x128xf32> -> vector<128x128xf32>
    %c0_3 = arith.constant 0 : index
    %c0_4 = arith.constant 0 : index
    %3 = vector.load %arg4[%c0_3, %c0_4] : memref<1x128xf32, #tpu.memory_space<vmem>>, vector<1x128xf32>
    %4 = vector.broadcast %3 : vector<1x128xf32> to vector<128x128xf32>
    %5 = arith.addf %2, %4 : vector<128x128xf32>
    %cst_5 = arith.constant 0.000000e+00 : f32
    %6 = vector.broadcast %cst_5 : f32 to vector<128x128xf32>
    %7 = arith.maximumf %5, %6 : vector<128x128xf32>
    %8 = arith.truncf %7 : vector<128x128xf32> to vector<128x128xbf16>
    %c0_6 = arith.constant 0 : index
    %c0_7 = arith.constant 0 : index
    %9 = vector.load %arg5[%c0_6, %c0_7] : memref<128x128xbf16, #tpu.memory_space<vmem>>, vector<128x128xbf16>
    tpu.vector_store %arg5[%c0_6, %c0_7], %8 {strides = array<i32>} : memref<128x128xbf16, #tpu.memory_space<vmem>>, vector<128x128xbf16>,
    return
  }
  func.func @transform_0(%arg0: i32, %arg1: i32) -> (i32, i32) {
    %c0_i32 = arith.constant 0 : i32
    %c0_i32_0 = arith.constant 0 : i32
    return %arg0, %c0_i32 : i32, i32
  }
  func.func @transform_1(%arg0: i32, %arg1: i32) -> (i32, i32) {
    %c0_i32 = arith.constant 0 : i32
    %c0_i32_0 = arith.constant 0 : i32
    %c0_i32_1 = arith.constant 0 : i32
    return %c0_i32, %c0_i32_0 : i32, i32
  }
  func.func @transform_2(%arg0: i32, %arg1: i32) -> (i32, i32) {
    %c0_i32 = arith.constant 0 : i32
    %c0_i32_0 = arith.constant 0 : i32
    %c0_i32_1 = arith.constant 0 : i32
    return %c0_i32, %c0_i32_0 : i32, i32
  }
  func.func @transform_3(%arg0: i32, %arg1: i32) -> (i32, i32) {
    %c0_i32 = arith.constant 0 : i32
    return %arg0, %arg1 : i32, i32
  }
}

module attributes {stable_mosaic.version = 11 : i64} {
  func.func @_mm_bn_ds_kernel(%arg0: i32, %arg1: i32, %arg2: memref<128x72xbf16, #tpu.memory_space<vmem>>, %arg3: memref<72x128xbf16, #tpu.memory_space<vmem>>, %arg4: memref<1x128xf32, #tpu.memory_space<vmem>>, %arg5: memref<128x4xbf16, #tpu.memory_space<vmem>>, %arg6: memref<4x128xbf16, #tpu.memory_space<vmem>>, %arg7: memref<1x128xf32, #tpu.memory_space<vmem>>, %arg8: memref<128x128xf32, #tpu.memory_space<vmem>>) attributes {dimension_semantics = [#tpu.dimension_semantics<parallel>, #tpu.dimension_semantics<parallel>], iteration_bounds = array<i64: 1, 1>, scalar_prefetch = 0 : i64, scratch_operands = 0 : i64, tpu.core_type = #tpu.core_type<tc>, window_params = [{transform_indices = @transform_0, window_bounds = array<i64: 128, 72>}, {pipeline_mode = #tpu.pipeline_mode<synchronous>, transform_indices = @transform_1, window_bounds = array<i64: 72, 128>}, {pipeline_mode = #tpu.pipeline_mode<synchronous>, transform_indices = @transform_2, window_bounds = array<i64: 1, 128>}, {transform_indices = @transform_3, window_bounds = array<i64: 128, 4>}, {pipeline_mode = #tpu.pipeline_mode<synchronous>, transform_indices = @transform_4, window_bounds = array<i64: 4, 128>}, {pipeline_mode = #tpu.pipeline_mode<synchronous>, transform_indices = @transform_5, window_bounds = array<i64: 1, 128>}, {transform_indices = @transform_6, window_bounds = array<i64: 128, 128>}]} {
    %c0 = arith.constant 0 : index
    %c0_0 = arith.constant 0 : index
    %0 = vector.load %arg2[%c0, %c0_0] : memref<128x72xbf16, #tpu.memory_space<vmem>>, vector<128x72xbf16>
    %c0_1 = arith.constant 0 : index
    %c0_2 = arith.constant 0 : index
    %1 = vector.load %arg3[%c0_1, %c0_2] : memref<72x128xbf16, #tpu.memory_space<vmem>>, vector<72x128xbf16>
    %cst = arith.constant dense<0.000000e+00> : vector<128x128xf32>
    %2 = tpu.matmul %0, %1, %cst {dimension_numbers = #tpu.dot_dimension_numbers<[1], [0], [0], [1], [0, 0, 1, 1], [], []>} : vector<128x72xbf16>, vector<72x128xbf16>, vector<128x128xf32> -> vector<128x128xf32>
    %c0_3 = arith.constant 0 : index
    %c0_4 = arith.constant 0 : index
    %3 = vector.load %arg5[%c0_3, %c0_4] : memref<128x4xbf16, #tpu.memory_space<vmem>>, vector<128x4xbf16>
    %c0_5 = arith.constant 0 : index
    %c0_6 = arith.constant 0 : index
    %4 = vector.load %arg6[%c0_5, %c0_6] : memref<4x128xbf16, #tpu.memory_space<vmem>>, vector<4x128xbf16>
    %cst_7 = arith.constant dense<0.000000e+00> : vector<128x128xf32>
    %5 = tpu.matmul %3, %4, %cst_7 {dimension_numbers = #tpu.dot_dimension_numbers<[1], [0], [0], [1], [0, 0, 1, 1], [], []>} : vector<128x4xbf16>, vector<4x128xbf16>, vector<128x128xf32> -> vector<128x128xf32>
    %c0_8 = arith.constant 0 : index
    %c0_9 = arith.constant 0 : index
    %6 = vector.load %arg4[%c0_8, %c0_9] : memref<1x128xf32, #tpu.memory_space<vmem>>, vector<1x128xf32>
    %7 = vector.broadcast %6 : vector<1x128xf32> to vector<128x128xf32>
    %8 = arith.addf %2, %7 : vector<128x128xf32>
    %9 = arith.addf %8, %5 : vector<128x128xf32>
    %c0_10 = arith.constant 0 : index
    %c0_11 = arith.constant 0 : index
    %10 = vector.load %arg7[%c0_10, %c0_11] : memref<1x128xf32, #tpu.memory_space<vmem>>, vector<1x128xf32>
    %11 = vector.broadcast %10 : vector<1x128xf32> to vector<128x128xf32>
    %12 = arith.addf %9, %11 : vector<128x128xf32>
    %cst_12 = arith.constant 0.000000e+00 : f32
    %13 = vector.broadcast %cst_12 : f32 to vector<128x128xf32>
    %14 = arith.maximumf %12, %13 : vector<128x128xf32>
    %c0_13 = arith.constant 0 : index
    %c0_14 = arith.constant 0 : index
    %15 = vector.load %arg8[%c0_13, %c0_14] : memref<128x128xf32, #tpu.memory_space<vmem>>, vector<128x128xf32>
    tpu.vector_store %arg8[%c0_13, %c0_14], %14 {strides = array<i32>} : memref<128x128xf32, #tpu.memory_space<vmem>>, vector<128x128xf32>,
    return
  }
  func.func @transform_0(%arg0: i32, %arg1: i32) -> (i32, i32) {
    %c0_i32 = arith.constant 0 : i32
    %c0_i32_0 = arith.constant 0 : i32
    return %arg0, %c0_i32 : i32, i32
  }
  func.func @transform_1(%arg0: i32, %arg1: i32) -> (i32, i32) {
    %c0_i32 = arith.constant 0 : i32
    %c0_i32_0 = arith.constant 0 : i32
    %c0_i32_1 = arith.constant 0 : i32
    return %c0_i32, %c0_i32_0 : i32, i32
  }
  func.func @transform_2(%arg0: i32, %arg1: i32) -> (i32, i32) {
    %c0_i32 = arith.constant 0 : i32
    %c0_i32_0 = arith.constant 0 : i32
    %c0_i32_1 = arith.constant 0 : i32
    return %c0_i32, %c0_i32_0 : i32, i32
  }
  func.func @transform_3(%arg0: i32, %arg1: i32) -> (i32, i32) {
    %c0_i32 = arith.constant 0 : i32
    %c0_i32_0 = arith.constant 0 : i32
    return %arg0, %c0_i32 : i32, i32
  }
  func.func @transform_4(%arg0: i32, %arg1: i32) -> (i32, i32) {
    %c0_i32 = arith.constant 0 : i32
    %c0_i32_0 = arith.constant 0 : i32
    %c0_i32_1 = arith.constant 0 : i32
    return %c0_i32, %c0_i32_0 : i32, i32
  }
  func.func @transform_5(%arg0: i32, %arg1: i32) -> (i32, i32) {
    %c0_i32 = arith.constant 0 : i32
    %c0_i32_0 = arith.constant 0 : i32
    %c0_i32_1 = arith.constant 0 : i32
    return %c0_i32, %c0_i32_0 : i32, i32
  }
  func.func @transform_6(%arg0: i32, %arg1: i32) -> (i32, i32) {
    %c0_i32 = arith.constant 0 : i32
    return %arg0, %arg1 : i32, i32
  }
}

</mosaic_0001>

<bundles_post_ra>
// kernel: basic_block_forward.2
= control target key start
LH: loop header
LB: loop body
LE: loop exit
PB: predicated region body
PF: predicated region fallthrough
CT: control target
= control target key end

     0   :  { %vm98_vm0 = vcmask 293888   ;;  %vm123_vm1 = vcmask 1041408   ;;  %s563_s1 = inlined_call_operand.vmem [shape: bf16[36,128], index: 1, kind: input, shape index: {}]   ;;  %s564_s0 = inlined_call_operand.vmem [shape: bf16[128,36], index: 0, kind: input, shape index: {}]   ;;  %s565_s2 = inlined_call_operand.vmem [shape: f32[1,128], index: 2, kind: input, shape index: {}]   ;;  %s566_s3 = inlined_call_operand.vmem [shape: bf16[128,128], index: 3, kind: output, shape index: {}]  }
   0x1   :  { %v464_v0 = vld [vmem:[%s563_s1] sm:$0xff]   ;;  %v465_v1 = vld [vmem:[%s563_s1 + $0x8] sm:$0xff]   ;;  %v466_v2 = vld [vmem:[%s563_s1 + $0x10] ss:$0 sps:$4 sm:$0x33]  }
   0x2   :  { %434 = vmatprep.subr.bf16.mxu0 %v464_v0  ;;  %456 = vmatprep.subr.bf16.mxu1 %v464_v0  ;;  %v467_v3 = vld [vmem:[%s564_s0] sm:$0xff]   ;;  %v125_v5 = vsel %vm123_vm1, %v466_v2, 0  ;;  %v469_v6 = vld [vmem:[%s564_s0 + $0x8] sm:$0xff]   ;;  %v471_v8 = vld [vmem:[%s564_s0 + $0x10] sm:$0xff]  }
   0x3   :  { %435 = vmatpush3.bf16.msra.mxu0 %v464_v0  ;;  %459 = vmatpush3.bf16.msra.mxu1 %v464_v0  ;;  %v468_v4 = vld [vmem:[%s564_s0 + $0x20] sm:$0xff]   ;;  %v470_v7 = vld [vmem:[%s564_s0 + $0x28] sm:$0xff]   ;;  %v472_v9 = vld [vmem:[%s564_s0 + $0x30] sm:$0xff]  }
   0x4   :  { %436 = vmatprep.subr.bf16.mxu0 %v465_v1  ;;  %457 = vmatprep.subr.bf16.mxu1 %v465_v1  ;;  %v473_v10 = vld [vmem:[%s564_s0 + $0x18] sm:$0xff]   ;;  %v324_v12 = vld [vmem:[%s565_s2] ss:$0 sm:$0xff] }
   0x5   :  { %440 = vmatprep.mubr.msk.bf16.mxu0 %vm98_vm0, %v467_v3  ;;  %448 = vmatprep.mubr.msk.bf16.mxu1 %vm98_vm0, %v468_v4  ;;  %v474_v11 = vld [vmem:[%s564_s0 + $0x38] sm:$0xff]  }
   0x7   :  { %437 = vmatpush3.bf16.msra.mxu0 %v465_v1  ;;  %460 = vmatpush3.bf16.msra.mxu1 %v465_v1 }
   0x8   :  { %462 = vmatprep.subr.msk.bf16.mxu0 %vm123_vm1, %v466_v2  ;;  %463 = vmatprep.subr.msk.bf16.mxu1 %vm123_vm1, %v466_v2 }
   0xb   :  { %439 = vmatpush3.bf16.msra.mxu0 %v125_v5  ;;  %461 = vmatpush3.bf16.msra.mxu1 %v125_v5 }
   0xe   :  { %441 = vmatmul.mubr.msk.bf16.vlgmr.msra.gmra.mrb[0].mxu0 %vm98_vm0, %v469_v6  ;;  %449 = vmatmul.mubr.msk.bf16.vlgmr.msra.gmra.mrb[0].mxu1 %vm98_vm0, %v470_v7 }
   0xf   :  { %444 = vmatprep.mubr.msk.bf16.mxu0 %vm98_vm0, %v471_v8  ;;  %452 = vmatprep.mubr.msk.bf16.mxu1 %vm98_vm0, %v472_v9 }
  0x16   :  { %445 = vmatmul.mubr.msk.bf16.gmra.mrb[4].mxu0 %vm98_vm0, %v473_v10  ;;  %453 = vmatmul.mubr.msk.bf16.gmra.mrb[4].mxu1 %vm98_vm0, %v474_v11 }
  0xe1   :  { %v442_v13 = vpop.f32.mrb[0].mxu0  ;;  %v450_v14 = vpop.f32.mrb[0].mxu1 }
  0xe2   :  { %v170_v15 = vadd.f32 %v442_v13, %v324_v12  ;;  %v202_v16 = vadd.f32 %v450_v14, %v324_v12  ;;  %v161_v17 = vpop.f32.mrb[1].mxu0  ;;  %v193_v18 = vpop.f32.mrb[1].mxu1 }
  0xe3   :  { %v162_v19 = vadd.f32 %v324_v12, %v161_v17  ;;  %v194_v20 = vadd.f32 %v324_v12, %v193_v18  ;;  %v443_v21 = vpop.f32.mrb[2].mxu0  ;;  %v451_v22 = vpop.f32.mrb[2].mxu1 }
  0xe4   :  { %v173_v23 = vadd.f32 %v443_v21, %v324_v12  ;;  %v205_v24 = vadd.f32 %v451_v22, %v324_v12  ;;  %v164_v25 = vpop.f32.mrb[3].mxu0  ;;  %v196_v26 = vpop.f32.mrb[3].mxu1  ;;  %v226_v29 = vmax.f32 %v170_v15, 0.0  ;;  %v234_v30 = vmax.f32 %v202_v16, 0.0 }
  0xe5   :  { %v165_v27 = vadd.f32 %v324_v12, %v164_v25  ;;  %v197_v28 = vadd.f32 %v324_v12, %v196_v26  ;;  %v224_v33 = vmax.f32 %v162_v19, 0.0  ;;  %v232_v34 = vmax.f32 %v194_v20, 0.0 }
  0xe6   :  { %v227_v31 = vmax.f32 %v173_v23, 0.0  ;;  %v235_v32 = vmax.f32 %v205_v24, 0.0 }
  0xe7   :  { %v225_v35 = vmax.f32 %v165_v27, 0.0  ;;  %v233_v36 = vmax.f32 %v197_v28, 0.0 }
  0xe8   :  { %v384_v37 = vpack.c.bf16 %v227_v31, %v226_v29  ;;  %v404_v38 = vpack.c.bf16 %v235_v32, %v234_v30 }
  0xe9   :  { %v379_v39 = vpack.c.bf16 %v225_v35, %v224_v33  ;;  %v399_v40 = vpack.c.bf16 %v233_v36, %v232_v34  ;;  %v446_v41 = vpop.f32.mrb[4].mxu0  ;;  %v454_v42 = vpop.f32.mrb[4].mxu1 }
  0xea   :  { %416 = vst [vmem:[%s566_s3 + $0x8] sm:$0xff] %v384_v37   ;;  %420 = vst [vmem:[%s566_s3 + $0x28] sm:$0xff] %v404_v38   ;;  %v186_v43 = vadd.f32 %v446_v41, %v324_v12  ;;  %v218_v44 = vadd.f32 %v454_v42, %v324_v12  ;;  %v177_v45 = vpop.f32.mrb[5].mxu0  ;;  %v209_v46 = vpop.f32.mrb[5].mxu1 }
  0xeb   :  { %380 = vst [vmem:[%s566_s3] sm:$0xff] %v379_v39   ;;  %419 = vst [vmem:[%s566_s3 + $0x20] sm:$0xff] %v399_v40   ;;  %v178_v47 = vadd.f32 %v324_v12, %v177_v45  ;;  %v210_v48 = vadd.f32 %v324_v12, %v209_v46  ;;  %v447_v49 = vpop.f32.mrb[6].mxu0  ;;  %v455_v50 = vpop.f32.mrb[6].mxu1 }
  0xec   :  { %v189_v51 = vadd.f32 %v447_v49, %v324_v12  ;;  %v221_v52 = vadd.f32 %v455_v50, %v324_v12  ;;  %v180_v53 = vpop.f32.mrb[7].mxu0  ;;  %v212_v54 = vpop.f32.mrb[7].mxu1  ;;  %v230_v57 = vmax.f32 %v186_v43, 0.0  ;;  %v238_v58 = vmax.f32 %v218_v44, 0.0 }
  0xed   :  { %v181_v55 = vadd.f32 %v324_v12, %v180_v53  ;;  %v213_v56 = vadd.f32 %v324_v12, %v212_v54  ;;  %v228_v61 = vmax.f32 %v178_v47, 0.0  ;;  %v236_v62 = vmax.f32 %v210_v48, 0.0 }
  0xee   :  { %v231_v59 = vmax.f32 %v189_v51, 0.0  ;;  %v239_v60 = vmax.f32 %v221_v52, 0.0 }
  0xef   :  { %v229_v63 = vmax.f32 %v181_v55, 0.0  ;;  %v237_v0 = vmax.f32 %v213_v56, 0.0 }
  0xf0   :  { %v394_v1 = vpack.c.bf16 %v231_v59, %v230_v57  ;;  %v414_v2 = vpack.c.bf16 %v239_v60, %v238_v58 }
  0xf1   :  { %v389_v3 = vpack.c.bf16 %v229_v63, %v228_v61  ;;  %v409_v4 = vpack.c.bf16 %v237_v0, %v236_v62 }
  0xf2   :  { %418 = vst [vmem:[%s566_s3 + $0x18] sm:$0xff] %v394_v1   ;;  %422 = vst [vmem:[%s566_s3 + $0x38] sm:$0xff] %v414_v2  }
  0xf3   :  { %417 = vst [vmem:[%s566_s3 + $0x10] sm:$0xff] %v389_v3   ;;  %421 = vst [vmem:[%s566_s3 + $0x30] sm:$0xff] %v409_v4  }

// kernel: basic_block_forward.3
= control target key start
LH: loop header
LB: loop body
LE: loop exit
PB: predicated region body
PF: predicated region fallthrough
CT: control target
= control target key end

     0   :  { %vm131_vm0 = vcmask 1041408   ;;  %vm106_vm1 = vcmask 31744   ;;  %vm306_vm2 = vcmask 588800   ;;  %vm331_vm3 = vcmask 1043456   ;;  %s885_s4 = inlined_call_operand.vmem [shape: bf16[4,128], index: 4, kind: input, shape index: {}]   ;;  %s886_s1 = inlined_call_operand.vmem [shape: bf16[72,128], index: 1, kind: input, shape index: {}]   ;;  %s887_s3 = inlined_call_operand.vmem [shape: bf16[128,4], index: 3, kind: input, shape index: {}]   ;;  %s888_s0 = inlined_call_operand.vmem [shape: bf16[128,72], index: 0, kind: input, shape index: {}]   ;;  %s889_s2 = inlined_call_operand.vmem [shape: f32[1,128], index: 2, kind: input, shape index: {}]   ;;  %s890_s5 = inlined_call_operand.vmem [shape: f32[1,128], index: 5, kind: input, shape index: {}]   ;;  %s891_s6 = inlined_call_operand.vmem [shape: f32[128,128], index: 6, kind: output, shape index: {}]  }
   0x1   :  { %v65_v0 = vld [vmem:[%s885_s4] sm:$0x3]  ;;  %v659_v4 = vld [vmem:[%s887_s3 + $0x8] sm:$0xff]   ;;  %v661_v6 = vld [vmem:[%s886_s1 + $0x10] sm:$0xff]  }
   0x2   :  { %654 = vmatprep.subr.msk.bf16.mxu0 %vm131_vm0, %v65_v0  ;;  %v133_v1 = vsel %vm131_vm0, %v65_v0, 0  ;;  %v657_v2 = vld [vmem:[%s886_s1] sm:$0xff]   ;;  %v660_v5 = vld [vmem:[%s886_s1 + $0x8] sm:$0xff]   ;;  %v662_v7 = vld [vmem:[%s887_s3 + $0x10] sm:$0xff]  }
   0x3   :  { %569 = vmatpush3.bf16.msra.mxu0 %v133_v1  ;;  %v658_v3 = vld [vmem:[%s887_s3] sm:$0xff]   ;;  %612 = vmatprep.subr.bf16.mxu1 %v657_v2  ;;  %v663_v8 = vld [vmem:[%s887_s3 + $0x18] sm:$0xff]   ;;  %v668_v11 = vld [vmem:[%s888_s0 + $0x10] sm:$0xff]  }
   0x4   :  { %586 = vmatprep.subr.bf16.mxu0 %v657_v2  ;;  %570 = vmatprep.mubr.msk.bf16.mxu0 %vm106_vm1, %v658_v3  ;;  %v664_v9 = vld [vmem:[%s886_s1 + $0x18] sm:$0xff]   ;;  %v666_v10 = vld [vmem:[%s887_s3 + $0x20] sm:$0xff]   ;;  %v667_v14 = vld [vmem:[%s887_s3 + $0x28] sm:$0xff]  }
   0x5   :  { %617 = vmatpush3.bf16.msra.mxu1 %v657_v2  ;;  %v665_v12 = vld [vmem:[%s886_s1 + $0x20] ss:$0 sps:$4 sm:$0xff]   ;;  %600 = vmatprep.mubr.msk.bf16.mxu1 %vm306_vm2, %v668_v11  ;;  %v670_v15 = vld [vmem:[%s887_s3 + $0x30] sm:$0xff]   ;;  %v669_v16 = vld [vmem:[%s888_s0 + $0x18] sm:$0xff]  }
   0x6   :  { %571 = vmatmul.mubr.msk.bf16.vlgmr.msra.gmra.mrb[0].mxu0 %vm106_vm1, %v659_v4  ;;  %613 = vmatprep.subr.bf16.mxu1 %v660_v5  ;;  %v333_v13 = vsel %vm331_vm3, %v665_v12, 0  ;;  %v672_v17 = vld [vmem:[%s888_s0 + $0x20] sm:$0xff]   ;;  %v671_v18 = vld [vmem:[%s887_s3 + $0x38] sm:$0xff]   ;;  %v673_v20 = vld [vmem:[%s888_s0 + $0x28] sm:$0xff]  }
   0x7   :  { %587 = vmatpush3.bf16.msra.mxu0 %v657_v2  ;;  %574 = vmatprep.mubr.msk.bf16.mxu0 %vm106_vm1, %v662_v7  ;;  %v674_v19 = vld [vmem:[%s888_s0] sm:$0xff]   ;;  %v676_v21 = vld [vmem:[%s888_s0 + $0x30] sm:$0xff]   ;;  %v675_v22 = vld [vmem:[%s888_s0 + $0x8] sm:$0xff]  }
   0x8   :  { %588 = vmatprep.subr.bf16.mxu0 %v660_v5  ;;  %v677_v23 = vld [vmem:[%s888_s0 + $0x38] sm:$0xff]   ;;  %v798_v28 = vld [vmem:[%s889_s2] ss:$0 sm:$0xff] }
   0x9   :  { %618 = vmatpush3.bf16.msra.mxu1 %v660_v5  ;;  %v805_v35 = vld [vmem:[%s890_s5] ss:$0 sm:$0xff] }
   0xa   :  { %614 = vmatprep.subr.bf16.mxu1 %v661_v6 }
   0xb   :  { %589 = vmatpush3.bf16.msra.mxu0 %v660_v5 }
   0xc   :  { %590 = vmatprep.subr.bf16.mxu0 %v661_v6 }
   0xd   :  { %619 = vmatpush3.bf16.msra.mxu1 %v661_v6 }
   0xe   :  { %575 = vmatmul.mubr.msk.bf16.gmra.mrb[4].mxu0 %vm106_vm1, %v663_v8  ;;  %615 = vmatprep.subr.bf16.mxu1 %v664_v9 }
   0xf   :  { %578 = vmatprep.mubr.msk.bf16.mxu0 %vm106_vm1, %v666_v10  ;;  %591 = vmatpush3.bf16.msra.mxu0 %v661_v6 }
  0x10   :  { %592 = vmatprep.subr.bf16.mxu0 %v664_v9 }
  0x11   :  { %620 = vmatpush3.bf16.msra.mxu1 %v664_v9 }
  0x12   :  { %656 = vmatprep.subr.msk.bf16.mxu1 %vm331_vm3, %v665_v12 }
  0x13   :  { %593 = vmatpush3.bf16.msra.mxu0 %v664_v9 }
  0x14   :  { %655 = vmatprep.subr.msk.bf16.mxu0 %vm331_vm3, %v665_v12 }
  0x15   :  { %621 = vmatpush3.bf16.msra.mxu1 %v333_v13 }
  0x16   :  { %579 = vmatmul.mubr.msk.bf16.gmra.mrb[8].mxu0 %vm106_vm1, %v667_v14 }
  0x17   :  { %582 = vmatprep.mubr.msk.bf16.mxu0 %vm106_vm1, %v670_v15  ;;  %595 = vmatpush3.bf16.msra.mxu0 %v333_v13 }
  0x18   :  { %601 = vmatmul.mubr.msk.bf16.vlgmr.msra.gmra.mrb[0].mxu1 %vm306_vm2, %v669_v16 }
  0x19   :  { %604 = vmatprep.mubr.msk.bf16.mxu1 %vm306_vm2, %v672_v17 }
  0x1e   :  { %583 = vmatmul.mubr.msk.bf16.gmra.mrb[12].mxu0 %vm106_vm1, %v671_v18 }
  0x1f   :  { %596 = vmatprep.mubr.msk.bf16.mxu0 %vm306_vm2, %v674_v19 }
  0x20   :  { %605 = vmatmul.mubr.msk.bf16.gmra.mrb[4].mxu1 %vm306_vm2, %v673_v20 }
  0x21   :  { %608 = vmatprep.mubr.msk.bf16.mxu1 %vm306_vm2, %v676_v21 }
  0x26   :  { %597 = vmatmul.mubr.msk.bf16.vlgmr.msra.gmra.mrb[0].mxu0 %vm306_vm2, %v675_v22 }
  0x28   :  { %609 = vmatmul.mubr.msk.bf16.gmra.mrb[8].mxu1 %vm306_vm2, %v677_v23 }
  0xe1   :  { %v576_v24 = vpop.f32.mrb[4].mxu0 }
  0xe2   :  { %v185_v25 = vpop.f32.mrb[5].mxu0  ;;  %v626_v30 = vadd.f32 %v576_v24, %v798_v28 }
  0xe3   :  { %v577_v26 = vpop.f32.mrb[6].mxu0  ;;  %v628_v32 = vadd.f32 %v798_v28, %v185_v25 }
  0xe4   :  { %v188_v27 = vpop.f32.mrb[7].mxu0  ;;  %v630_v36 = vadd.f32 %v577_v26, %v798_v28 }
  0xe5   :  { %v632_v40 = vadd.f32 %v798_v28, %v188_v27 }
  0xe9   :  { %v580_v29 = vpop.f32.mrb[8].mxu0 }
  0xea   :  { %v201_v31 = vpop.f32.mrb[9].mxu0  ;;  %v634_v53 = vadd.f32 %v580_v29, %v798_v28 }
  0xeb   :  { %v581_v33 = vpop.f32.mrb[10].mxu0  ;;  %v602_v34 = vpop.f32.mrb[0].mxu1  ;;  %v636_v56 = vadd.f32 %v798_v28, %v201_v31 }
  0xec   :  { %v627_v37 = vadd.f32 %v626_v30, %v602_v34  ;;  %v204_v38 = vpop.f32.mrb[11].mxu0  ;;  %v385_v39 = vpop.f32.mrb[1].mxu1  ;;  %v638_v60 = vadd.f32 %v581_v33, %v798_v28 }
  0xed   :  { %v629_v41 = vadd.f32 %v628_v32, %v385_v39  ;;  %v603_v42 = vpop.f32.mrb[2].mxu1  ;;  %v640_v0 = vadd.f32 %v798_v28, %v204_v38 }
  0xee   :  { %v461_v43 = vadd.f32 %v627_v37, %v805_v35  ;;  %v631_v44 = vadd.f32 %v630_v36, %v603_v42  ;;  %v388_v45 = vpop.f32.mrb[3].mxu1 }
  0xef   :  { %v459_v46 = vadd.f32 %v629_v41, %v805_v35  ;;  %v633_v47 = vadd.f32 %v632_v40, %v388_v45 }
  0xf0   :  { %v477_v48 = vmax.f32 %v461_v43, 0.0  ;;  %v462_v49 = vadd.f32 %v631_v44, %v805_v35 }
  0xf1   :  { %v475_v50 = vmax.f32 %v459_v46, 0.0  ;;  %v460_v51 = vadd.f32 %v633_v47, %v805_v35  ;;  %v584_v52 = vpop.f32.mrb[12].mxu0 }
  0xf2   :  { %493 = vst [vmem:[%s891_s6 + $0x30] sm:$0xff] %v477_v48  ;;  %v478_v54 = vmax.f32 %v462_v49, 0.0  ;;  %v217_v55 = vpop.f32.mrb[13].mxu0  ;;  %v642_v13 = vadd.f32 %v584_v52, %v798_v28 }
  0xf3   :  { %491 = vst [vmem:[%s891_s6 + $0x20] sm:$0xff] %v475_v50  ;;  %v476_v57 = vmax.f32 %v460_v51, 0.0  ;;  %v585_v58 = vpop.f32.mrb[14].mxu0  ;;  %v606_v59 = vpop.f32.mrb[4].mxu1  ;;  %v644_v17 = vadd.f32 %v798_v28, %v217_v55 }
  0xf4   :  { %494 = vst [vmem:[%s891_s6 + $0x38] sm:$0xff] %v478_v54  ;;  %v635_v61 = vadd.f32 %v634_v53, %v606_v59  ;;  %v220_v62 = vpop.f32.mrb[15].mxu0  ;;  %v401_v63 = vpop.f32.mrb[5].mxu1  ;;  %v646_v22 = vadd.f32 %v585_v58, %v798_v28 }
  0xf5   :  { %492 = vst [vmem:[%s891_s6 + $0x28] sm:$0xff] %v476_v57  ;;  %v637_v1 = vadd.f32 %v636_v56, %v401_v63  ;;  %v607_v2 = vpop.f32.mrb[6].mxu1  ;;  %v648_v29 = vadd.f32 %v798_v28, %v220_v62 }
  0xf6   :  { %v465_v3 = vadd.f32 %v635_v61, %v805_v35  ;;  %v639_v4 = vadd.f32 %v638_v60, %v607_v2  ;;  %v404_v5 = vpop.f32.mrb[7].mxu1 }
  0xf7   :  { %v463_v6 = vadd.f32 %v637_v1, %v805_v35  ;;  %v641_v7 = vadd.f32 %v640_v0, %v404_v5 }
  0xf8   :  { %v481_v8 = vmax.f32 %v465_v3, 0.0  ;;  %v466_v9 = vadd.f32 %v639_v4, %v805_v35 }
  0xf9   :  { %v479_v10 = vmax.f32 %v463_v6, 0.0  ;;  %v464_v11 = vadd.f32 %v641_v7, %v805_v35  ;;  %v598_v12 = vpop.f32.mrb[0].mxu0 }
  0xfa   :  { %497 = vst [vmem:[%s891_s6 + $0x50] sm:$0xff] %v481_v8  ;;  %v482_v14 = vmax.f32 %v466_v9, 0.0  ;;  %v378_v15 = vadd.f32 %v598_v12, %v798_v28  ;;  %v369_v16 = vpop.f32.mrb[1].mxu0 }
  0xfb   :  { %495 = vst [vmem:[%s891_s6 + $0x40] sm:$0xff] %v479_v10  ;;  %v480_v18 = vmax.f32 %v464_v11, 0.0  ;;  %v370_v19 = vadd.f32 %v798_v28, %v369_v16  ;;  %v599_v20 = vpop.f32.mrb[2].mxu0  ;;  %v610_v21 = vpop.f32.mrb[8].mxu1 }
  0xfc   :  { %498 = vst [vmem:[%s891_s6 + $0x58] sm:$0xff] %v482_v14  ;;  %v457_v23 = vadd.f32 %v805_v35, %v378_v15  ;;  %v381_v24 = vadd.f32 %v599_v20, %v798_v28  ;;  %v643_v25 = vadd.f32 %v642_v13, %v610_v21  ;;  %v372_v26 = vpop.f32.mrb[3].mxu0  ;;  %v417_v27 = vpop.f32.mrb[9].mxu1 }
  0xfd   :  { %496 = vst [vmem:[%s891_s6 + $0x48] sm:$0xff] %v480_v18  ;;  %v455_v30 = vadd.f32 %v805_v35, %v370_v19  ;;  %v373_v31 = vadd.f32 %v798_v28, %v372_v26  ;;  %v645_v32 = vadd.f32 %v644_v17, %v417_v27  ;;  %v611_v33 = vpop.f32.mrb[10].mxu1 }
  0xfe   :  { %v473_v34 = vmax.f32 %v457_v23, 0.0  ;;  %v458_v36 = vadd.f32 %v805_v35, %v381_v24  ;;  %v469_v37 = vadd.f32 %v643_v25, %v805_v35  ;;  %v647_v38 = vadd.f32 %v646_v22, %v611_v33  ;;  %v420_v39 = vpop.f32.mrb[11].mxu1 }
  0xff   :  { %v471_v40 = vmax.f32 %v455_v30, 0.0  ;;  %v456_v41 = vadd.f32 %v805_v35, %v373_v31  ;;  %v467_v42 = vadd.f32 %v645_v32, %v805_v35  ;;  %v649_v43 = vadd.f32 %v648_v29, %v420_v39 }
 0x100   :  { %489 = vst [vmem:[%s891_s6 + $0x10] sm:$0xff] %v473_v34  ;;  %v474_v28 = vmax.f32 %v458_v36, 0.0  ;;  %v485_v44 = vmax.f32 %v469_v37, 0.0  ;;  %v470_v45 = vadd.f32 %v647_v38, %v805_v35 }
 0x101   :  { %487 = vst [vmem:[%s891_s6] sm:$0xff] %v471_v40  ;;  %v472_v46 = vmax.f32 %v456_v41, 0.0  ;;  %v483_v47 = vmax.f32 %v467_v42, 0.0  ;;  %v468_v48 = vadd.f32 %v649_v43, %v805_v35 }
 0x102   :  { %490 = vst [vmem:[%s891_s6 + $0x18] sm:$0xff] %v474_v28  ;;  %501 = vst [vmem:[%s891_s6 + $0x70] sm:$0xff] %v485_v44  ;;  %v486_v49 = vmax.f32 %v470_v45, 0.0 }
 0x103   :  { %488 = vst [vmem:[%s891_s6 + $0x8] sm:$0xff] %v472_v46  ;;  %499 = vst [vmem:[%s891_s6 + $0x60] sm:$0xff] %v483_v47  ;;  %v484_v50 = vmax.f32 %v468_v48, 0.0 }
 0x104   :  { %502 = vst [vmem:[%s891_s6 + $0x78] sm:$0xff] %v486_v49 }
 0x105   :  { %500 = vst [vmem:[%s891_s6 + $0x68] sm:$0xff] %v484_v50 }

</bundles_post_ra>
